<compile_context>
chip_gen: v7x
topology: tpu7x:2x2x1
jax: 0.10.0
libtpu: 0.0.40
codegen_flags: <defaults>
</compile_context>

<pallas_src>
import functools

import jax
import jax.numpy as jnp
from jax.experimental import pallas as pl
from jax.experimental.pallas import tpu as pltpu


def _dueling_dqn_kernel(
    x_ref,      # (TB, IN)   f32   streamed batch tile (cast to bf16 on-chip)
    w1_ref,     # (IN, 256)  bf16
    b1_ref,     # (1, 256)   f32
    w2_ref,     # (256, 128) bf16
    b2_ref,     # (1, 128)   f32
    wh1_ref,    # (128, 128) bf16  [wv1 | wa1]
    bh1_ref,    # (1, 128)   f32   [bv1 | ba1]
    wq_ref,     # (128, A)   bf16  dueling combine folded in
    bq_ref,     # (1, A)     f32   dueling combine folded in
    q_ref,      # (TB, A)    f32
):
    # On-chip f32 -> bf16 cast of the streamed input (no HBM pre-pass).
    x = x_ref[...].astype(jnp.bfloat16)

    # shared_fc: Linear(IN,256) + ReLU + Dropout(identity) + Linear(256,128) + ReLU
    h1 = jnp.dot(x, w1_ref[...], preferred_element_type=jnp.float32) + b1_ref[...]
    h1 = jnp.maximum(h1, 0.0).astype(jnp.bfloat16)
    h2 = jnp.dot(h1, w2_ref[...], preferred_element_type=jnp.float32) + b2_ref[...]
    h2 = jnp.maximum(h2, 0.0).astype(jnp.bfloat16)

    # Fused head first layers: cols [:64] = value branch, cols [64:] = advantage.
    hh = jnp.dot(h2, wh1_ref[...], preferred_element_type=jnp.float32) + bh1_ref[...]
    hh = jnp.maximum(hh, 0.0).astype(jnp.bfloat16)

    # Final matmul: dueling combine (V + A - mean(A)) is pre-folded into wq/bq,
    # so this emits q directly.
    q = jnp.dot(hh, wq_ref[...], preferred_element_type=jnp.float32) + bq_ref[...]
    q_ref[...] = q.astype(q_ref.dtype)


def pack_params(params):
    """Fuse / fold / cast the raw (in,out)-layout params for the kernel (done once)."""
    a_size = params["wa2"].shape[1]
    head_h = params["wv1"].shape[1]  # 64

    # Fuse value/advantage first layers into one 128-wide matmul.
    wh1 = jnp.concatenate([params["wv1"], params["wa1"]], axis=1)   # (128, 128)
    bh1 = jnp.concatenate([params["bv1"], params["ba1"]], axis=1)   # (1, 128)

    # Fold the dueling combine q = V + (A - mean(A)) into the last layer, in f32,
    # BEFORE casting to bf16 (so wa2 is rounded only once).
    wa2 = params["wa2"]                                             # (64, A)
    wa2_centered = wa2 - jnp.mean(wa2, axis=1, keepdims=True)       # (64, A)
    wv2_bcast = jnp.broadcast_to(params["wv2"], (head_h, a_size))   # (64, A)
    wq = jnp.concatenate([wv2_bcast, wa2_centered], axis=0)         # (128, A)
    ba2 = params["ba2"]                                             # (1, A)
    bq = params["bv2"] + ba2 - jnp.mean(ba2, axis=1, keepdims=True) # (1, A)

    bf16 = jnp.bfloat16
    return {
        "w1": params["w1"].astype(bf16),          # (IN, 256), no K padding
        "b1": params["b1"].astype(jnp.float32),
        "w2": params["w2"].astype(bf16),
        "b2": params["b2"].astype(jnp.float32),
        "wh1": wh1.astype(bf16),
        "bh1": bh1.astype(jnp.float32),
        "wq": wq.astype(bf16),
        "bq": bq.astype(jnp.float32),
    }


@functools.partial(jax.jit, static_argnames=("tile_b",))
def dueling_dqn_forward(x, packed, *, tile_b=4096):
    """x: (B, IN) float32; packed: output of pack_params. Returns (B, A) f32 Q-values.

    tile_b: batch rows per grid step (multiple of 8). 4096 keeps the per-step
    VMEM footprint ~20-25 MiB -> fits v5e/v6e (128 MiB) and v7x (64 MiB/TC),
    while amortizing the ~0.35 us per-grid-step overhead.
    """
    B, in_size = x.shape
    assert packed["w1"].shape[0] == in_size, "input feature dim mismatch"
    hidden1 = packed["w1"].shape[1]
    hidden2 = packed["w2"].shape[1]
    head_w = packed["wh1"].shape[1]
    a_size = packed["wq"].shape[1]

    # Batch tiling: at least 2 grid steps for mid-size batches so both v7x
    # TensorCores get work under dimension_semantics=("parallel",).
    if B > tile_b:
        tb = tile_b
    elif B >= 16 and B % 16 == 0:
        tb = B // 2
    else:
        tb = B
    grid = (pl.cdiv(B, tb),)

    operands = (
        x,
        packed["w1"], packed["b1"],
        packed["w2"], packed["b2"],
        packed["wh1"], packed["bh1"],
        packed["wq"], packed["bq"],
    )

    def _resident(shape):
        # Weights/biases: constant block index -> fetched once, stay in VMEM.
        # (pl.Buffered(1) would drop their second buffer; ~0.25 MiB, not worth
        #  the churn next to the activation footprint.)
        return pl.BlockSpec(shape, lambda i: (0, 0))

    in_specs = [pl.BlockSpec((tb, in_size), lambda i: (i, 0))]   # raw f32 x tile
    in_specs += [_resident(op.shape) for op in operands[1:]]
    # Narrow (tb, A) output: write bytes are negligible; only lane-pad if a
    # bundle dump shows masked stores / output DMA on the critical path.
    out_specs = pl.BlockSpec((tb, a_size), lambda i: (i, 0))

    flops = 2 * B * (in_size * hidden1 + hidden1 * hidden2
                     + hidden2 * head_w + head_w * a_size)
    bytes_accessed = (
        x.size * x.dtype.itemsize
        + B * a_size * 4
        + sum(int(p.size) * p.dtype.itemsize for p in operands[1:])
    )

    return pl.pallas_call(
        _dueling_dqn_kernel,
        out_shape=jax.ShapeDtypeStruct((B, a_size), jnp.float32),
        grid=grid,
        in_specs=in_specs,
        out_specs=out_specs,
        compiler_params=pltpu.CompilerParams(
            dimension_semantics=("parallel",),
            vmem_limit_bytes=48 * 1024 * 1024,
        ),
        cost_estimate=pl.CostEstimate(
            flops=flops, transcendentals=0, bytes_accessed=bytes_accessed),
    )(*operands)


# ----------------------------- init & references -----------------------------

def xavier_uniform(key, fan_in, fan_out, dtype=jnp.float32):
    limit = jnp.sqrt(6.0 / (fan_in + fan_out))
    return jax.random.uniform(key, (fan_in, fan_out), dtype=dtype,
                              minval=-limit, maxval=limit)


def init_params(key, input_size=180, action_size=2):
    keys = jax.random.split(key, 6)
    return {
        # shared_fc
        "w1": xavier_uniform(keys[0], input_size, 256),
        "b1": jnp.zeros((1, 256), jnp.float32),
        "w2": xavier_uniform(keys[1], 256, 128),
        "b2": jnp.zeros((1, 128), jnp.float32),
        # value_fc
        "wv1": xavier_uniform(keys[2], 128, 64),
        "bv1": jnp.zeros((1, 64), jnp.float32),
        "wv2": xavier_uniform(keys[3], 64, 1),
        "bv2": jnp.zeros((1, 1), jnp.float32),
        # advantage_fc
        "wa1": xavier_uniform(keys[4], 128, 64),
        "ba1": jnp.zeros((1, 64), jnp.float32),
        "wa2": xavier_uniform(keys[5], 64, action_size),
        "ba2": jnp.zeros((1, action_size), jnp.float32),
    }


def reference_forward(x, p):
    """Pure-JAX f32 reference of the PyTorch forward (inference mode)."""
    h1 = jnp.maximum(x @ p["w1"] + p["b1"], 0.0)
    h2 = jnp.maximum(h1 @ p["w2"] + p["b2"], 0.0)
    v = jnp.maximum(h2 @ p["wv1"] + p["bv1"], 0.0) @ p["wv2"] + p["bv2"]
    a = jnp.maximum(h2 @ p["wa1"] + p["ba1"], 0.0) @ p["wa2"] + p["ba2"]
    return v + (a - a.mean(axis=1, keepdims=True))


def reference_forward_packed(x, packed):
    """Pure-JAX replay of the exact kernel math (fused / folded / bf16 operands)."""
    dot = lambda a, b: jnp.dot(a, b, preferred_element_type=jnp.float32)
    xb = x.astype(jnp.bfloat16)
    h1 = jnp.maximum(dot(xb, packed["w1"]) + packed["b1"], 0.0).astype(jnp.bfloat16)
    h2 = jnp.maximum(dot(h1, packed["w2"]) + packed["b2"], 0.0).astype(jnp.bfloat16)
    hh = jnp.maximum(dot(h2, packed["wh1"]) + packed["bh1"], 0.0).astype(jnp.bfloat16)
    return dot(hh, packed["wq"]) + packed["bq"]


if __name__ == "__main__":
    key = jax.random.PRNGKey(0)
    k_params, k_x = jax.random.split(key)

    input_size = 180
    action_size = 2

    params = init_params(k_params, input_size=input_size, action_size=action_size)
    packed = pack_params(params)

    # batch=2: tiny single-tile case; batch=32: exercises the 2-step grid path.
    for batch in (2, 32):
        kx = jax.random.fold_in(k_x, batch)
        x = jax.random.normal(kx, (batch, input_size), dtype=jnp.float32)

        q = jax.block_until_ready(dueling_dqn_forward(x, packed))
        assert q.shape == (batch, action_size)

        # Exact-path check (same fused/folded/bf16 math, pure JAX).
        q_packed_ref = reference_forward_packed(x, packed)
        assert jnp.allclose(q, q_packed_ref, atol=1e-2, rtol=1e-2), \
            f"batch={batch}: mismatch vs packed bf16 reference"

        # Semantics check vs the original f32 PyTorch-style forward (bf16 MXU
        # operands introduce small per-layer rounding -> relaxed tolerance).
        q_f32_ref = reference_forward(x, params)
        assert jnp.allclose(q, q_f32_ref, atol=5e-2, rtol=5e-2), \
            f"batch={batch}: mismatch vs f32 reference"

    print("KERNEL_OK")
</pallas_src>

<mosaic_0001>
module attributes {stable_mosaic.version = 11 : i64} {
  func.func @_dueling_dqn_kernel(%arg0: i32, %arg1: memref<2x180xf32, #tpu.memory_space<vmem>>, %arg2: memref<180x256xbf16, #tpu.memory_space<vmem>>, %arg3: memref<1x256xf32, #tpu.memory_space<vmem>>, %arg4: memref<256x128xbf16, #tpu.memory_space<vmem>>, %arg5: memref<1x128xf32, #tpu.memory_space<vmem>>, %arg6: memref<128x128xbf16, #tpu.memory_space<vmem>>, %arg7: memref<1x128xf32, #tpu.memory_space<vmem>>, %arg8: memref<128x2xbf16, #tpu.memory_space<vmem>>, %arg9: memref<1x2xf32, #tpu.memory_space<vmem>>, %arg10: memref<2x2xf32, #tpu.memory_space<vmem>>) attributes {dimension_semantics = [#tpu.dimension_semantics<parallel>], iteration_bounds = array<i64: 1>, scalar_prefetch = 0 : i64, scratch_operands = 0 : i64, tpu.core_type = #tpu.core_type<tc>, window_params = [{transform_indices = @transform_0, window_bounds = array<i64: 2, 180>}, {pipeline_mode = #tpu.pipeline_mode<synchronous>, transform_indices = @transform_1, window_bounds = array<i64: 180, 256>}, {pipeline_mode = #tpu.pipeline_mode<synchronous>, transform_indices = @transform_2, window_bounds = array<i64: 1, 256>}, {pipeline_mode = #tpu.pipeline_mode<synchronous>, transform_indices = @transform_3, window_bounds = array<i64: 256, 128>}, {pipeline_mode = #tpu.pipeline_mode<synchronous>, transform_indices = @transform_4, window_bounds = array<i64: 1, 128>}, {pipeline_mode = #tpu.pipeline_mode<synchronous>, transform_indices = @transform_5, window_bounds = array<i64: 128, 128>}, {pipeline_mode = #tpu.pipeline_mode<synchronous>, transform_indices = @transform_6, window_bounds = array<i64: 1, 128>}, {pipeline_mode = #tpu.pipeline_mode<synchronous>, transform_indices = @transform_7, window_bounds = array<i64: 128, 2>}, {pipeline_mode = #tpu.pipeline_mode<synchronous>, transform_indices = @transform_8, window_bounds = array<i64: 1, 2>}, {transform_indices = @transform_9, window_bounds = array<i64: 2, 2>}]} {
    %c0 = arith.constant 0 : index
    %c0_0 = arith.constant 0 : index
    %0 = vector.load %arg1[%c0, %c0_0] : memref<2x180xf32, #tpu.memory_space<vmem>>, vector<2x180xf32>
    %1 = arith.truncf %0 : vector<2x180xf32> to vector<2x180xbf16>
    %c0_1 = arith.constant 0 : index
    %c0_2 = arith.constant 0 : index
    %2 = vector.load %arg2[%c0_1, %c0_2] : memref<180x256xbf16, #tpu.memory_space<vmem>>, vector<180x256xbf16>
    %cst = arith.constant dense<0.000000e+00> : vector<2x256xf32>
    %3 = tpu.matmul %1, %2, %cst {dimension_numbers = #tpu.dot_dimension_numbers<[1], [0], [0], [1], [0, 0, 1, 1], [], []>} : vector<2x180xbf16>, vector<180x256xbf16>, vector<2x256xf32> -> vector<2x256xf32>
    %c0_3 = arith.constant 0 : index
    %c0_4 = arith.constant 0 : index
    %4 = vector.load %arg3[%c0_3, %c0_4] : memref<1x256xf32, #tpu.memory_space<vmem>>, vector<1x256xf32>
    %5 = vector.broadcast %4 : vector<1x256xf32> to vector<2x256xf32>
    %6 = arith.addf %3, %5 : vector<2x256xf32>
    %cst_5 = arith.constant 0.000000e+00 : f32
    %7 = vector.broadcast %cst_5 : f32 to vector<2x256xf32>
    %8 = arith.maximumf %6, %7 : vector<2x256xf32>
    %9 = arith.truncf %8 : vector<2x256xf32> to vector<2x256xbf16>
    %c0_6 = arith.constant 0 : index
    %c0_7 = arith.constant 0 : index
    %10 = vector.load %arg4[%c0_6, %c0_7] : memref<256x128xbf16, #tpu.memory_space<vmem>>, vector<256x128xbf16>
    %cst_8 = arith.constant dense<0.000000e+00> : vector<2x128xf32>
    %11 = tpu.matmul %9, %10, %cst_8 {dimension_numbers = #tpu.dot_dimension_numbers<[1], [0], [0], [1], [0, 0, 1, 1], [], []>} : vector<2x256xbf16>, vector<256x128xbf16>, vector<2x128xf32> -> vector<2x128xf32>
    %c0_9 = arith.constant 0 : index
    %c0_10 = arith.constant 0 : index
    %12 = vector.load %arg5[%c0_9, %c0_10] : memref<1x128xf32, #tpu.memory_space<vmem>>, vector<1x128xf32>
    %13 = vector.broadcast %12 : vector<1x128xf32> to vector<2x128xf32>
    %14 = arith.addf %11, %13 : vector<2x128xf32>
    %cst_11 = arith.constant 0.000000e+00 : f32
    %15 = vector.broadcast %cst_11 : f32 to vector<2x128xf32>
    %16 = arith.maximumf %14, %15 : vector<2x128xf32>
    %17 = arith.truncf %16 : vector<2x128xf32> to vector<2x128xbf16>
    %c0_12 = arith.constant 0 : index
    %c0_13 = arith.constant 0 : index
    %18 = vector.load %arg6[%c0_12, %c0_13] : memref<128x128xbf16, #tpu.memory_space<vmem>>, vector<128x128xbf16>
    %cst_14 = arith.constant dense<0.000000e+00> : vector<2x128xf32>
    %19 = tpu.matmul %17, %18, %cst_14 {dimension_numbers = #tpu.dot_dimension_numbers<[1], [0], [0], [1], [0, 0, 1, 1], [], []>} : vector<2x128xbf16>, vector<128x128xbf16>, vector<2x128xf32> -> vector<2x128xf32>
    %c0_15 = arith.constant 0 : index
    %c0_16 = arith.constant 0 : index
    %20 = vector.load %arg7[%c0_15, %c0_16] : memref<1x128xf32, #tpu.memory_space<vmem>>, vector<1x128xf32>
    %21 = vector.broadcast %20 : vector<1x128xf32> to vector<2x128xf32>
    %22 = arith.addf %19, %21 : vector<2x128xf32>
    %cst_17 = arith.constant 0.000000e+00 : f32
    %23 = vector.broadcast %cst_17 : f32 to vector<2x128xf32>
    %24 = arith.maximumf %22, %23 : vector<2x128xf32>
    %25 = arith.truncf %24 : vector<2x128xf32> to vector<2x128xbf16>
    %c0_18 = arith.constant 0 : index
    %c0_19 = arith.constant 0 : index
    %26 = vector.load %arg8[%c0_18, %c0_19] : memref<128x2xbf16, #tpu.memory_space<vmem>>, vector<128x2xbf16>
    %cst_20 = arith.constant dense<0.000000e+00> : vector<2x2xf32>
    %27 = tpu.matmul %25, %26, %cst_20 {dimension_numbers = #tpu.dot_dimension_numbers<[1], [0], [0], [1], [0, 0, 1, 1], [], []>} : vector<2x128xbf16>, vector<128x2xbf16>, vector<2x2xf32> -> vector<2x2xf32>
    %c0_21 = arith.constant 0 : index
    %c0_22 = arith.constant 0 : index
    %28 = vector.load %arg9[%c0_21, %c0_22] : memref<1x2xf32, #tpu.memory_space<vmem>>, vector<1x2xf32>
    %29 = vector.broadcast %28 : vector<1x2xf32> to vector<2x2xf32>
    %30 = arith.addf %27, %29 : vector<2x2xf32>
    %c0_23 = arith.constant 0 : index
    %c0_24 = arith.constant 0 : index
    %31 = vector.load %arg10[%c0_23, %c0_24] : memref<2x2xf32, #tpu.memory_space<vmem>>, vector<2x2xf32>
    tpu.vector_store %arg10[%c0_23, %c0_24], %30 {strides = array<i32>} : memref<2x2xf32, #tpu.memory_space<vmem>>, vector<2x2xf32>,
    return
  }
  func.func @transform_0(%arg0: i32) -> (i32, i32) {
    %c0_i32 = arith.constant 0 : i32
    %c0_i32_0 = arith.constant 0 : i32
    return %arg0, %c0_i32 : i32, i32
  }
  func.func @transform_1(%arg0: i32) -> (i32, i32) {
    %c0_i32 = arith.constant 0 : i32
    %c0_i32_0 = arith.constant 0 : i32
    %c0_i32_1 = arith.constant 0 : i32
    return %c0_i32, %c0_i32_0 : i32, i32
  }
  func.func @transform_2(%arg0: i32) -> (i32, i32) {
    %c0_i32 = arith.constant 0 : i32
    %c0_i32_0 = arith.constant 0 : i32
    %c0_i32_1 = arith.constant 0 : i32
    return %c0_i32, %c0_i32_0 : i32, i32
  }
  func.func @transform_3(%arg0: i32) -> (i32, i32) {
    %c0_i32 = arith.constant 0 : i32
    %c0_i32_0 = arith.constant 0 : i32
    %c0_i32_1 = arith.constant 0 : i32
    return %c0_i32, %c0_i32_0 : i32, i32
  }
  func.func @transform_4(%arg0: i32) -> (i32, i32) {
    %c0_i32 = arith.constant 0 : i32
    %c0_i32_0 = arith.constant 0 : i32
    %c0_i32_1 = arith.constant 0 : i32
    return %c0_i32, %c0_i32_0 : i32, i32
  }
  func.func @transform_5(%arg0: i32) -> (i32, i32) {
    %c0_i32 = arith.constant 0 : i32
    %c0_i32_0 = arith.constant 0 : i32
    %c0_i32_1 = arith.constant 0 : i32
    return %c0_i32, %c0_i32_0 : i32, i32
  }
  func.func @transform_6(%arg0: i32) -> (i32, i32) {
    %c0_i32 = arith.constant 0 : i32
    %c0_i32_0 = arith.constant 0 : i32
    %c0_i32_1 = arith.constant 0 : i32
    return %c0_i32, %c0_i32_0 : i32, i32
  }
  func.func @transform_7(%arg0: i32) -> (i32, i32) {
    %c0_i32 = arith.constant 0 : i32
    %c0_i32_0 = arith.constant 0 : i32
    %c0_i32_1 = arith.constant 0 : i32
    return %c0_i32, %c0_i32_0 : i32, i32
  }
  func.func @transform_8(%arg0: i32) -> (i32, i32) {
    %c0_i32 = arith.constant 0 : i32
    %c0_i32_0 = arith.constant 0 : i32
    %c0_i32_1 = arith.constant 0 : i32
    return %c0_i32, %c0_i32_0 : i32, i32
  }
  func.func @transform_9(%arg0: i32) -> (i32, i32) {
    %c0_i32 = arith.constant 0 : i32
    %c0_i32_0 = arith.constant 0 : i32
    return %arg0, %c0_i32 : i32, i32
  }
}

</mosaic_0001>

<bundles_post_ra>
// kernel: dueling_dqn_forward.1
= control target key start
LH: loop header
LB: loop body
LE: loop exit
PB: predicated region body
PF: predicated region fallthrough
CT: control target
= control target key end

     0   :  { %14 = vsyncpa [#allocation3], 0  ;;  %s1167_s0 = inlined_call_operand.vmem [shape: f32[2,180], index: 0, kind: input, shape index: {}]   ;;  %s1168_s1 = inlined_call_operand.hbm [shape: bf16[180,256], index: 1, kind: input, shape index: {}]   ;;  %s1169_s2 = inlined_call_operand.vmem [shape: f32[1,256], index: 2, kind: input, shape index: {}]   ;;  %s1170_s3 = inlined_call_operand.hbm [shape: bf16[256,128], index: 3, kind: input, shape index: {}]   ;;  %s1171_s4 = inlined_call_operand.vmem [shape: f32[1,128], index: 4, kind: input, shape index: {}]   ;;  %s1172_s5 = inlined_call_operand.vmem [shape: bf16[128,128], index: 5, kind: input, shape index: {}]   ;;  %s1173_s6 = inlined_call_operand.vmem [shape: f32[1,128], index: 6, kind: input, shape index: {}]   ;;  %s1174_s7 = inlined_call_operand.vmem [shape: bf16[128,2], index: 7, kind: input, shape index: {}]   ;;  %s1175_s8 = inlined_call_operand.vmem [shape: f32[1,2], index: 8, kind: input, shape index: {}]   ;;  %s1176_s9 = inlined_call_operand.hbm [shape: f32[2,2], index: 9, kind: output, shape index: {}]  }
   0x1   :  { %15 = vsyncpa [#allocation6], 0 }
   0x2   :  { %16 = vsyncpa [#allocation4], 0  ;;  %s991_s30 = smov [#allocation2]   ;;  %s919_s13 = scalar_lea.hbm %s1168_s1, 2944 }
   0x3   :  { %s24_s10 = sshll.u32 %s991_s30, 4  ;;  %p920_p0 = scmp.ne.s32.totalorder %s1168_s1, %s919_s13  ;;  %s25_s10 = int_to_ptr.vmem [resolvable:$true] %s24_s10 }
   0x4   :  { %p923_p1 = scmp.lt.u32.totalorder %s919_s13, %s1168_s1 }
   0x6   :  { %p925_p2 = pnand %p923_p1, %p920_p0 }
   0x8   :  { %928 = shalt.err (!%p925_p2)
}
   0x9   :  { %s929_s18 = scalar_lea.vmem %s25_s10, 2944  ;;  %p934_p4 = scmp.lt.s32.totalorder %s25_s10, %s25_s10 }
   0xa   :  { %p930_p3 = scmp.ne.s32.totalorder %s25_s10, %s929_s18  ;;  %p935_p5 = scmp.lt.s32.totalorder %s929_s18, %s929_s18 }
   0xc   :  { %p936_p6 = por %p935_p5, %p934_p4 }
   0xe   :  { %p937_p7 = pnand %p936_p6, %p930_p3 }
  0x10   :  { %940 = shalt.err (!%p937_p7)
}
  0x11   :  { %s992_s19 = smov 128   ;;  %s993_s20 = smov 8  }
  0x12   :  { %30 = dma.hbm_to_vmem [thread:$0]  %s1168_s1, 2944, %s25_s10, [#allocation3], %s992_s19, %s992_s19, %s993_s20  }
  0x13   :  { %s994_s23 = smov [#allocation5]   ;;  %s941_s27 = scalar_lea.hbm %s1170_s3, 2048 }
  0x14   :  { %s38_s24 = sshll.u32 %s994_s23, 4  ;;  %p942_p8 = scmp.ne.s32.totalorder %s1170_s3, %s941_s27  ;;  %s39_s24 = int_to_ptr.vmem [resolvable:$true] %s38_s24 }
  0x15   :  { %p945_p9 = scmp.lt.u32.totalorder %s941_s27, %s1170_s3 }
  0x17   :  { %p947_p10 = pnand %p945_p9, %p942_p8 }
  0x19   :  { %950 = shalt.err (!%p947_p10)
}
  0x1a   :  { %s951_s12 = scalar_lea.vmem %s39_s24, 2048  ;;  %p956_p12 = scmp.lt.s32.totalorder %s39_s24, %s39_s24 }
  0x1b   :  { %p952_p11 = scmp.ne.s32.totalorder %s39_s24, %s951_s12  ;;  %p957_p13 = scmp.lt.s32.totalorder %s951_s12, %s951_s12 }
  0x1d   :  { %p958_p0 = por %p957_p13, %p956_p12 }
  0x1f   :  { %p959_p1 = pnand %p958_p0, %p952_p11 }
  0x21   :  { %962 = shalt.err (!%p959_p1)
}
  0x22   :  { %s995_s1 = smov 64   ;;  %s996_s10 = smov 4  }
  0x23   :  { %44 = dma.hbm_to_vmem [thread:$0]  %s1170_s3, 2048, %s39_s24, [#allocation6], %s995_s1, %s995_s1, %s996_s10  }
  0x24   :  { %985 = dma.done.wait [#allocation3], 2944  }
  0x25   :  { %986 = vsyncadd [#allocation3], 4294964352 }
  0x26   :  { %987 = dma.done.wait [#allocation6], 2048  }
  0x27   :  { %988 = vsyncadd [#allocation6], 4294965248  ;;  %v852_v0 = vld [vmem:[#allocation2 + $0x4] ss:$8 sps:$4 sm:$0xff]   ;;  %v854_v1 = vld [vmem:[#allocation2] ss:$8 sps:$4 sm:$0xff]   ;;  %v101_v47 = vlaneseq }
  0x28   :  { %237 = vmatprep.subr.bf16.mxu0 %v852_v0  ;;  %v855_v2 = vld [vmem:[#allocation2 + $0x14] ss:$8 sps:$4 sm:$0xff]   ;;  %v857_v3 = vld [vmem:[#allocation2 + $0x10] ss:$8 sps:$4 sm:$0xff]   ;;  %v858_v4 = vld [vmem:[#allocation2 + $0x24] ss:$8 sps:$4 sm:$0xff]  }
  0x29   :  { %238 = vmatpush1.bf16.msra.mxu0 %v854_v1  ;;  %v860_v5 = vld [vmem:[#allocation2 + $0x20] ss:$8 sps:$4 sm:$0xff]   ;;  %v861_v6 = vld [vmem:[#allocation2 + $0x34] ss:$8 sps:$4 sm:$0xff]   ;;  %v863_v7 = vld [vmem:[#allocation2 + $0x30] ss:$8 sps:$4 sm:$0xff]  }
  0x2a   :  { %239 = vmatprep.subr.bf16.mxu0 %v855_v2  ;;  %v864_v8 = vld [vmem:[#allocation2 + $0x44] ss:$8 sps:$4 sm:$0xff]   ;;  %v866_v9 = vld [vmem:[#allocation2 + $0x40] ss:$8 sps:$4 sm:$0xff]   ;;  %v867_v10 = vld [vmem:[#allocation2 + $0x54] ss:$8 sps:$4 sm:$0xff]  }
  0x2b   :  { %v701_v11 = vld.sshfl [vmem:[%s1167_s0] sm:$0x33 pattern:$0x76325410]  ;;  %v887_v13 = vld [vmem:[#allocation5 + $0x40] sm:$0xff]   ;;  %vm226_vm0 = vcmask 424960  }
  0x2c   :  { %v71_v12 = vcombine.high %v701_v11, %v701_v11  ;;  %v869_v14 = vld [vmem:[#allocation2 + $0x50] ss:$8 sps:$4 sm:$0xff]   ;;  %v870_v16 = vld [vmem:[#allocation2 + $0x64] ss:$8 sps:$4 sm:$0xff]   ;;  %763 = vmatprep.subr.bf16.mxu1 %v887_v13  ;;  %v872_v21 = vld [vmem:[#allocation2 + $0x60] ss:$8 sps:$4 sm:$0xff]   ;;  %v74_v41 = vpack.c.bf16 %v701_v11, %v701_v11 }
  0x2d   :  { %240 = vmatpush1.bf16.msra.mxu0 %v857_v3  ;;  %v888_v15 = vld [vmem:[#allocation5] sm:$0xff]   ;;  %v889_v18 = vld [vmem:[#allocation5 + $0x48] sm:$0xff]   ;;  %v891_v20 = vld [vmem:[#allocation5 + $0x50] sm:$0xff]   ;;  %vm230_vm1 = vcmask 1041408   ;;  %v997_v46 = vmov 0.0   ;;  %v102_v48 = vshrl.u32 %v101_v47, 7 }
  0x2e   :  { %241 = vmatprep.subr.bf16.mxu0 %v858_v4  ;;  %v75_v17 = vpack.c.bf16 %v71_v12, %v71_v12  ;;  %764 = vmatpush3.bf16.msra.mxu1 %v888_v15  ;;  %v890_v19 = vld [vmem:[#allocation5 + $0x8] sm:$0xff]   ;;  %v873_v22 = vld [vmem:[#allocation2 + $0x74] ss:$8 sps:$4 sm:$0xff]   ;;  %v892_v23 = vld [vmem:[#allocation5 + $0x10] sm:$0xff]   ;;  %vm998_vm2 = vmmov 0   ;;  %s999_s27 = smov [#allocation7]  }
  0x2f   :  { %765 = vmatprep.subr.bf16.mxu1 %v889_v18  ;;  %v893_v24 = vld [vmem:[#allocation5 + $0x58] sm:$0xff]   ;;  %v876_v26 = vld [vmem:[#allocation2 + $0x84] ss:$8 sps:$4 sm:$0xff]   ;;  %v895_v28 = vld [vmem:[#allocation5 + $0x60] sm:$0xff]   ;;  %v103_v49 = vsub.s32 0, %v102_v48  ;;  %v107_v51 = vsub.s32 1, %v102_v48 }
  0x30   :  { %727 = vmatprep.mubr.msk.bf16.mxu0 %vm226_vm0, %v75_v17  ;;  %v875_v25 = vld [vmem:[#allocation2 + $0x70] ss:$8 sps:$4 sm:$0xff]   ;;  %v878_v29 = vld [vmem:[#allocation2 + $0x80] ss:$8 sps:$4 sm:$0xff]   ;;  %v879_v31 = vld [vmem:[#allocation2 + $0x94] ss:$8 sps:$4 sm:$0xff]  }
  0x31   :  { %242 = vmatpush1.bf16.msra.mxu0 %v860_v5  ;;  %v894_v27 = vld [vmem:[#allocation5 + $0x18] sm:$0xff]   ;;  %v896_v30 = vld [vmem:[#allocation5 + $0x20] sm:$0xff]   ;;  %v897_v32 = vld [vmem:[#allocation5 + $0x68] sm:$0xff]   ;;  %s691_s28 = sshll.u32 %s999_s27, 4  ;;  %vm683_vm3 = vcmask 9216   ;;  %s692_s28 = int_to_ptr.vmem [resolvable:$true] %s691_s28 }
  0x32   :  { %243 = vmatprep.subr.bf16.mxu0 %v861_v6  ;;  %766 = vmatpush3.bf16.msra.mxu1 %v890_v19  ;;  %v881_v33 = vld [vmem:[#allocation2 + $0x90] ss:$8 sps:$4 sm:$0xff]   ;;  %v898_v34 = vld [vmem:[#allocation5 + $0x28] sm:$0xff]   ;;  %v899_v42 = vld [vmem:[#allocation5 + $0x70] sm:$0xff]   ;;  %p968_p3 = scmp.lt.s32.totalorder %s692_s28, %s692_s28 }
  0x33   :  { %767 = vmatprep.subr.bf16.mxu1 %v891_v20  ;;  %v882_v35 = vld [vmem:[#allocation2 + $0xa4] ss:$8 sps:$4 sm:$0xff]   ;;  %v98_v36 = vld [vmem:[#allocation2 + $0xb0] sm:$0x33]  ;;  %v884_v37 = vld [vmem:[#allocation2 + $0xa0] ss:$8 sps:$4 sm:$0xff]  }
  0x34   :  { %v725_v38 = vcombine.high %v98_v36, %v98_v36  ;;  %v724_v39 = vcombine.low %v98_v36, %v98_v36  ;;  %v900_v43 = vld [vmem:[#allocation5 + $0x30] sm:$0xff]   ;;  %v901_v44 = vld [vmem:[#allocation5 + $0x78] sm:$0xff]   ;;  %v99_v50 = vld [vmem:[%s1169_s2] sm:$0x3] }
  0x35   :  { %244 = vmatpush1.bf16.msra.mxu0 %v863_v7  ;;  %v902_v45 = vld [vmem:[#allocation5 + $0x38] sm:$0xff]   ;;  %v104_v52 = vrot.slane %v99_v50, %v103_v49  ;;  %v108_v53 = vrot.slane %v99_v50, %v107_v51  ;;  %v903_v63 = vld [vmem:[%s1172_s5] sm:$0xff]   ;;  %v904_v1 = vld [vmem:[%s1172_s5 + $0x8] sm:$0xff]  }
  0x36   :  { %245 = vmatprep.subr.bf16.mxu0 %v864_v8  ;;  %768 = vmatpush3.bf16.msra.mxu1 %v892_v23  ;;  %v232_v40 = vsel %vm230_vm1, %v724_v39, 0  ;;  %v905_v2 = vld [vmem:[%s1172_s5 + $0x10] sm:$0xff]   ;;  %v906_v3 = vld [vmem:[%s1172_s5 + $0x18] sm:$0xff]   ;;  %v907_v4 = vld [vmem:[%s1172_s5 + $0x20] sm:$0xff]  }
  0x37   :  { %769 = vmatprep.subr.bf16.mxu1 %v893_v24  ;;  %v908_v5 = vld [vmem:[%s1172_s5 + $0x28] sm:$0xff]   ;;  %v909_v6 = vld [vmem:[%s1172_s5 + $0x30] sm:$0xff]   ;;  %v910_v7 = vld [vmem:[%s1172_s5 + $0x38] sm:$0xff]  }
  0x38   :  { %v911_v8 = vld [vmem:[%s1174_s7] sm:$0xff]   ;;  %v914_v11 = vld [vmem:[%s1174_s7 + $0x18] sm:$0xff]   ;;  %v916_v13 = vld [vmem:[%s1174_s7 + $0x28] sm:$0xff]  }
  0x39   :  { %246 = vmatpush1.bf16.msra.mxu0 %v866_v9  ;;  %v912_v9 = vld [vmem:[%s1174_s7 + $0x8] sm:$0xff]   ;;  %v915_v12 = vld [vmem:[%s1174_s7 + $0x20] sm:$0xff]   ;;  %v917_v23 = vld [vmem:[%s1174_s7 + $0x30] sm:$0xff]  }
  0x3a   :  { %247 = vmatprep.subr.bf16.mxu0 %v867_v10  ;;  %770 = vmatpush3.bf16.msra.mxu1 %v894_v27  ;;  %v913_v10 = vld [vmem:[%s1174_s7 + $0x10] sm:$0xff]   ;;  %v728_v15 = vld [vmem:[%s1171_s4] ss:$0 sm:$0xff]  ;;  %v918_v24 = vld [vmem:[%s1174_s7 + $0x38] sm:$0xff]  }
  0x3b   :  { %771 = vmatprep.subr.bf16.mxu1 %v895_v28 }
  0x3d   :  { %248 = vmatpush1.bf16.msra.mxu0 %v869_v14 }
  0x3e   :  { %249 = vmatprep.subr.bf16.mxu0 %v870_v16  ;;  %772 = vmatpush3.bf16.msra.mxu1 %v896_v30 }
  0x3f   :  { %773 = vmatprep.subr.bf16.mxu1 %v897_v32 }
  0x41   :  { %250 = vmatpush1.bf16.msra.mxu0 %v872_v21 }
  0x42   :  { %251 = vmatprep.subr.bf16.mxu0 %v873_v22  ;;  %774 = vmatpush3.bf16.msra.mxu1 %v898_v34 }
  0x43   :  { %775 = vmatprep.subr.bf16.mxu1 %v899_v42 }
  0x45   :  { %252 = vmatpush1.bf16.msra.mxu0 %v875_v25  ;;  %v745_v25 = vld [vmem:[%s1173_s6] ss:$0 sm:$0xff]  ;;  %s963_s6 = scalar_lea.vmem %s692_s28, 32 }
  0x46   :  { %253 = vmatprep.subr.bf16.mxu0 %v876_v26  ;;  %776 = vmatpush3.bf16.msra.mxu1 %v900_v43  ;;  %p964_p2 = scmp.ne.s32.totalorder %s692_s28, %s963_s6  ;;  %p969_p4 = scmp.lt.s32.totalorder %s963_s6, %s963_s6 }
  0x47   :  { %777 = vmatprep.subr.bf16.mxu1 %v901_v44 }
  0x48   :  { %p970_p5 = por %p969_p4, %p968_p3 }
  0x49   :  { %254 = vmatpush1.bf16.msra.mxu0 %v878_v29 }
  0x4a   :  { %255 = vmatprep.subr.bf16.mxu0 %v879_v31  ;;  %778 = vmatpush3.bf16.msra.mxu1 %v902_v45  ;;  %p971_p6 = pnand %p970_p5, %p964_p2 }
  0x4b   :  { %803 = vmatprep.subr.bf16.mxu1 %v997_v46 }
  0x4d   :  { %256 = vmatpush1.bf16.msra.mxu0 %v881_v33  ;;  %v754_v33 = vld [vmem:[%s1175_s8] ss:$0 sm:$0xff] }
  0x4e   :  { %257 = vmatprep.subr.bf16.mxu0 %v882_v35 }
  0x51   :  { %258 = vmatpush1.bf16.msra.mxu0 %v884_v37 }
  0x52   :  { %726 = vmatprep.subr.msk.bf16.mxu0 %vm230_vm1, %v725_v38 }
  0x55   :  { %260 = vmatpush1.bf16.msra.mxu0 %v232_v40 }
  0x56   :  { %823 = vmatprep.subr.bf16.mxu0 %v997_v46 }
  0x58   :  { %270 = vmatmul.mubr.bf16.vlgmr.msra.gmra.mrb[0].mxu0 %v74_v41 }
  0x59   :  { %839 = vmatprep.mubr.msk.bf16.mxu0 %vm998_vm2, %v997_v46  ;;  %824 = vmatpush3.bf16.msra.mxu0 %v911_v8 }
  0x5a   :  { %825 = vmatprep.subr.bf16.mxu0 %v997_v46 }
  0x5d   :  { %826 = vmatpush3.bf16.msra.mxu0 %v912_v9 }
  0x5e   :  { %827 = vmatprep.subr.bf16.mxu0 %v997_v46 }
  0x61   :  { %828 = vmatpush3.bf16.msra.mxu0 %v913_v10 }
  0x62   :  { %829 = vmatprep.subr.bf16.mxu0 %v997_v46 }
  0x65   :  { %830 = vmatpush3.bf16.msra.mxu0 %v914_v11 }
  0x66   :  { %831 = vmatprep.subr.bf16.mxu0 %v997_v46 }
  0x69   :  { %832 = vmatpush3.bf16.msra.mxu0 %v915_v12 }
  0x6a   :  { %833 = vmatprep.subr.bf16.mxu0 %v997_v46 }
  0x6d   :  { %834 = vmatpush3.bf16.msra.mxu0 %v916_v13 }
  0x6e   :  { %835 = vmatprep.subr.bf16.mxu0 %v997_v46 }
  0x71   :  { %836 = vmatpush3.bf16.msra.mxu0 %v917_v23 }
  0x72   :  { %837 = vmatprep.subr.bf16.mxu0 %v997_v46 }
  0x75   :  { %838 = vmatpush3.bf16.msra.mxu0 %v918_v24 }
 0x12b   :  { %v271_v54 = vpop.f32.mrb[0].mxu0 }
 0x12c   :  { %v272_v55 = vadd.f32 %v271_v54, %v104_v52  ;;  %v273_v56 = vpop.f32.mrb[1].mxu0 }
 0x12d   :  { %v274_v57 = vadd.f32 %v273_v56, %v108_v53  ;;  %v275_v58 = vpop.f32.mrb[2].mxu0 }
 0x12e   :  { %v278_v59 = vmax.f32 %v272_v55, 0.0  ;;  %v276_v60 = vpop.f32.mrb[3].mxu0 }
 0x12f   :  { %v279_v61 = vmax.f32 %v274_v57, 0.0 }
 0x130   :  { %v280_v0 = vpack.c.bf16 %v278_v59, %v278_v59 }
 0x131   :  { %v281_v62 = vpack.c.bf16 %v279_v61, %v279_v61 }
 0x133   :  { %449 = vmatprep.mubr.bf16.mxu1 %v281_v62 }
 0x134   :  { %450 = vmatmul.mubr.bf16.vlgmr.msra.gmra.mrb[0].mxu1 %v280_v0 }
 0x135   :  { %804 = vmatpush3.bf16.msra.mxu1 %v903_v63  ;;  %819 = vmatprep.mubr.msk.bf16.mxu1 %vm998_vm2, %v997_v46 }
 0x136   :  { %805 = vmatprep.subr.bf16.mxu1 %v997_v46 }
 0x139   :  { %806 = vmatpush3.bf16.msra.mxu1 %v904_v1 }
 0x13a   :  { %807 = vmatprep.subr.bf16.mxu1 %v997_v46 }
 0x13d   :  { %808 = vmatpush3.bf16.msra.mxu1 %v905_v2 }
 0x13e   :  { %809 = vmatprep.subr.bf16.mxu1 %v997_v46 }
 0x141   :  { %810 = vmatpush3.bf16.msra.mxu1 %v906_v3 }
 0x142   :  { %811 = vmatprep.subr.bf16.mxu1 %v997_v46 }
 0x145   :  { %812 = vmatpush3.bf16.msra.mxu1 %v907_v4 }
 0x146   :  { %813 = vmatprep.subr.bf16.mxu1 %v997_v46 }
 0x149   :  { %814 = vmatpush3.bf16.msra.mxu1 %v908_v5 }
 0x14a   :  { %815 = vmatprep.subr.bf16.mxu1 %v997_v46 }
 0x14d   :  { %816 = vmatpush3.bf16.msra.mxu1 %v909_v6 }
 0x14e   :  { %817 = vmatprep.subr.bf16.mxu1 %v997_v46 }
 0x151   :  { %818 = vmatpush3.bf16.msra.mxu1 %v910_v7 }
 0x207   :  { %v779_v14 = vpop.f32.mrb[0].mxu1 }
 0x208   :  { %v780_v16 = vpop.f32.mrb[1].mxu1 }
 0x209   :  { %v781_v17 = vadd.f32 %v780_v16, %v779_v14  ;;  %v782_v18 = vpop.f32.mrb[2].mxu1 }
 0x20a   :  { %v783_v19 = vpop.f32.mrb[3].mxu1 }
 0x20b   :  { %v452_v20 = vadd.f32 %v781_v17, %v728_v15 }
 0x20d   :  { %v457_v21 = vmax.f32 %v452_v20, 0.0 }
 0x20f   :  { %v458_v22 = vpack.c.bf16 %v457_v21, %v457_v21 }
 0x211   :  { %820 = vmatmul.mubr.bf16.vlgmr.msra.gmra.mrb[4].mxu1 %v458_v22 }
 0x2e4   :  { %v564_v26 = vpop.f32.mrb[4].mxu1 }
 0x2e5   :  { %v565_v27 = vadd.f32 %v745_v25, %v564_v26  ;;  %v821_v28 = vpop.f32.mrb[5].mxu1 }
 0x2e6   :  { %v567_v29 = vpop.f32.mrb[6].mxu1 }
 0x2e7   :  { %v570_v30 = vmax.f32 %v565_v27, 0.0  ;;  %v822_v31 = vpop.f32.mrb[7].mxu1 }
 0x2e9   :  { %v571_v32 = vpack.c.bf16 %v570_v30, %v570_v30 }
 0x2eb   :  { %840 = vmatmul.mubr.bf16.vlgmr.msra.gmra.mrb[4].mxu0 %v571_v32 }
 0x3be   :  { %v677_v34 = vpop.f32.mrb[4].mxu0 }
 0x3bf   :  { %v678_v35 = vadd.f32 %v754_v33, %v677_v34  ;;  %v841_v36 = vpop.f32.mrb[5].mxu0 }
 0x3c0   :  { %v680_v37 = vpop.f32.mrb[6].mxu0 }
 0x3c1   :  { %v842_v38 = vpop.f32.mrb[7].mxu0  ;;  %684 = vst.msk [vmem:[#allocation7] sm:$0x3] %vm683_vm3, %v678_v35 }
 0x3c2   :  { %974 = shalt.err (!%p971_p6)
}
 0x3c3   :  { %s975_s8 = scalar_lea.hbm %s1176_s9, 32 }
 0x3c4   :  { %p976_p7 = scmp.ne.s32.totalorder %s1176_s9, %s975_s8  ;;  %p979_p8 = scmp.lt.u32.totalorder %s975_s8, %s1176_s9 }
 0x3c6   :  { %p981_p9 = pnand %p979_p8, %p976_p7 }
 0x3c8   :  { %984 = shalt.err (!%p981_p9)
}
 0x3c9   :  { %694 = dma.vmem_to_hbm [thread:$0]  %s692_s28, 32, %s1176_s9, [#allocation4]  }
 0x3ca   :  { %989 = dma.done.wait [#allocation4], 32  }
 0x3cb   :  { %990 = vsyncadd [#allocation4], 4294967264 }
 0x3cc   :  { %698 = vsyncpa [#allocation3], 1 }
 0x3cd   :  { %699 = vsyncpa [#allocation6], 1 }
 0x3ce   :  { %700 = vsyncpa [#allocation4], 1 }

</bundles_post_ra>
